<compile_context>
chip_gen: v6e
topology: v6e:2x2x1
jax: 0.10.0
libtpu: 0.0.40
codegen_flags: <defaults>
</compile_context>

<pallas_src>
import math
from functools import partial

import jax
import jax.numpy as jnp
from jax.experimental import pallas as pl
from jax.experimental.pallas import tpu as pltpu


def _round_up(a: int, b: int) -> int:
    return (a + b - 1) // b * b


def _lora_linear_kernel(x_ref, wo_ref, b_ref, h_ref, wu_ref, o_ref, acc_ref):
    """Grid = (i: M tiles, j: OUT tiles, k: IN reduction tiles).

    x_ref : [tm, tk]        activation tile
    wo_ref: [tk, tn]        W_org^T tile (streamed along k)
    b_ref : [1, tn]         bias tile
    h_ref : [tm, r_pad]     precomputed LoRA hidden (x @ W_down^T), resident per i
    wu_ref: [r_pad, tn]     scale-folded W_up^T tile, resident per j
    o_ref : [tm, tn]        output tile
    acc_ref: f32 VMEM accumulator, resident across the k reduction
    """
    k = pl.program_id(2)
    nk = pl.num_programs(2)

    # ---- init accumulator at the start of each reduction ----
    @pl.when(k == 0)
    def _():
        acc_ref[...] = jnp.zeros_like(acc_ref)

    # ---- base path partial product: x_tile @ W_org^T tile ----
    acc_ref[...] += jnp.dot(x_ref[...], wo_ref[...],
                            preferred_element_type=jnp.float32)

    # ---- epilogue only on the last reduction step ----
    @pl.when(k == nk - 1)
    def _():
        # LoRA up-projection in the input dtype (full-rate MXU for bf16),
        # f32 accumulation; scale is already folded into wu.
        lora = jnp.dot(h_ref[...], wu_ref[...],
                       preferred_element_type=jnp.float32)            # [tm, tn]
        out = acc_ref[...] + b_ref[...].astype(jnp.float32) + lora
        o_ref[...] = out.astype(o_ref.dtype)


def lora_linear_forward(x, w_org, b_org, w_down, w_up, *, alpha=1, lora_dim=4,
                        multiplier=1.0, tm=512, tn=512, tk=1024):
    """x: [B,S,in]; w_org: [out,in]; b_org: [out]; w_down: [r,in]; w_up: [out,r]."""
    B, S, IN = x.shape
    OUT = w_org.shape[0]
    R = w_down.shape[0]
    scale = float(multiplier) * float(alpha) / float(lora_dim)

    M = B * S
    # Hardware granules: f32 min tile (8, 128); bf16 needs (16, 128).
    row_g = 8 if x.dtype == jnp.float32 else 16

    # Clamp tiles for small problems, keep them hardware-aligned.
    tm = min(tm, _round_up(M, row_g))
    tn = min(tn, _round_up(OUT, 128))
    tk = min(tk, _round_up(IN, 128))
    r_pad = _round_up(max(R, 1), 128)     # pad LoRA rank to a full lane group

    M_pad = _round_up(M, tm)
    IN_pad = _round_up(IN, tk)
    OUT_pad = _round_up(OUT, tn)

    # Wrapper-side plumbing (all exact math — padded contributions are zero):
    #   * flatten rows, pre-transpose weights to [in, out]
    #   * precompute the tiny LoRA hidden h = x @ W_down^T  ([M, r] matmul)
    #   * fold multiplier*scale into W_up^T
    #   * zero-pad every dim to its tile so all BlockSpecs are lane/sublane dense
    x2 = x.reshape(M, IN)
    h = jnp.dot(x2, w_down.T, preferred_element_type=jnp.float32).astype(x.dtype)

    x2 = jnp.pad(x2, ((0, M_pad - M), (0, IN_pad - IN)))                 # [M_pad, IN_pad]
    wo_t = jnp.pad(w_org.T, ((0, IN_pad - IN), (0, OUT_pad - OUT)))      # [IN_pad, OUT_pad]
    b2 = jnp.pad(b_org.reshape(1, OUT), ((0, 0), (0, OUT_pad - OUT)))    # [1, OUT_pad]
    h_pad = jnp.pad(h, ((0, M_pad - M), (0, r_pad - R)))                 # [M_pad, r_pad]
    wu_t = jnp.pad((w_up * scale).astype(x.dtype).T,
                   ((0, r_pad - R), (0, OUT_pad - OUT)))                 # [r_pad, OUT_pad]

    grid = (M_pad // tm, OUT_pad // tn, IN_pad // tk)

    out2 = pl.pallas_call(
        _lora_linear_kernel,
        out_shape=jax.ShapeDtypeStruct((M_pad, OUT_pad), x.dtype),
        grid_spec=pltpu.PrefetchScalarGridSpec(
            num_scalar_prefetch=0,
            grid=grid,
            in_specs=[
                pl.BlockSpec((tm, tk), lambda i, j, k: (i, k)),       # x tile
                pl.BlockSpec((tk, tn), lambda i, j, k: (k, j)),       # W_org^T tile
                pl.BlockSpec((1, tn), lambda i, j, k: (0, j)),        # bias tile
                pl.BlockSpec((tm, r_pad), lambda i, j, k: (i, 0)),    # LoRA hidden h
                pl.BlockSpec((r_pad, tn), lambda i, j, k: (0, j)),    # scaled W_up^T
            ],
            out_specs=pl.BlockSpec((tm, tn), lambda i, j, k: (i, j)),
            scratch_shapes=[
                pltpu.VMEM((tm, tn), jnp.float32),     # base-path f32 accumulator
            ],
        ),
        compiler_params=pltpu.CompilerParams(
            # Row tiles AND OUT tiles shard across TensorCores (h no longer
            # depends on j ordering); the IN reduction stays sequential.
            dimension_semantics=("parallel", "parallel", "arbitrary"),
            vmem_limit_bytes=48 * 1024 * 1024,
        ),
    )(x2, wo_t, b2, h_pad, wu_t)

    return out2[:M, :OUT].reshape(B, S, OUT)


def _reference(x, w_org, b_org, w_down, w_up, *, alpha=1, lora_dim=4, multiplier=1.0):
    scale = float(multiplier) * float(alpha) / float(lora_dim)
    base = jnp.einsum("bsi,oi->bso", x, w_org) + b_org
    lora = jnp.einsum("bsr,or->bso", jnp.einsum("bsi,ri->bsr", x, w_down), w_up)
    return base + lora * scale


def _make_params(keys, IN, OUT, R):
    k_wo, k_bo, k_wd, k_wu = keys
    # Deterministic init matching nn.Linear / kaiming_uniform_(a=sqrt(5)) bounds.
    # Note: the PyTorch module zero-inits lora_up; we use small random values so
    # the LoRA path is actually exercised — the computation semantics are identical.
    bound = 1.0 / math.sqrt(IN)
    w_org = jax.random.uniform(k_wo, (OUT, IN), minval=-bound, maxval=bound,
                               dtype=jnp.float32)
    b_org = jax.random.uniform(k_bo, (OUT,), minval=-bound, maxval=bound,
                               dtype=jnp.float32)
    w_down = jax.random.uniform(k_wd, (R, IN), minval=-bound, maxval=bound,
                                dtype=jnp.float32)
    w_up = 0.01 * jax.random.normal(k_wu, (OUT, R), dtype=jnp.float32)
    return w_org, b_org, w_down, w_up


if __name__ == "__main__":
    key = jax.random.PRNGKey(0)
    keys = jax.random.split(key, 10)

    # --- Test 1: small shapes from the module (Linear(32, 32), lora_dim=4) -------
    B, S, IN, OUT, R = 2, 8, 32, 32, 4
    x = jax.random.normal(keys[0], (B, S, IN), dtype=jnp.float32)
    w_org, b_org, w_down, w_up = _make_params(keys[1:5], IN, OUT, R)

    out = lora_linear_forward(x, w_org, b_org, w_down, w_up,
                              alpha=1, lora_dim=R, multiplier=1.0)
    out = jax.block_until_ready(out)
    ref = _reference(x, w_org, b_org, w_down, w_up,
                     alpha=1, lora_dim=R, multiplier=1.0)
    assert out.shape == (B, S, OUT)
    assert jnp.allclose(out, ref, atol=1e-4, rtol=1e-4), "mismatch vs reference (small)"

    # --- Test 2: non-aligned shapes with explicit small tiles to exercise the
    #     full 3-D grid (row tail padding, K accumulation, OUT tiling) ------------
    B2, S2, IN2, OUT2, R2 = 2, 72, 200, 320, 4
    x2 = jax.random.normal(keys[5], (B2, S2, IN2), dtype=jnp.float32)
    w_org2, b_org2, w_down2, w_up2 = _make_params(keys[6:10], IN2, OUT2, R2)

    out2 = lora_linear_forward(x2, w_org2, b_org2, w_down2, w_up2,
                               alpha=1, lora_dim=R2, multiplier=1.0,
                               tm=64, tn=128, tk=128)
    out2 = jax.block_until_ready(out2)
    ref2 = _reference(x2, w_org2, b_org2, w_down2, w_up2,
                      alpha=1, lora_dim=R2, multiplier=1.0)
    assert out2.shape == (B2, S2, OUT2)
    assert jnp.allclose(out2, ref2, atol=1e-4, rtol=1e-4), "mismatch vs reference (tiled)"

    print("KERNEL_OK")
</pallas_src>

<mosaic_0001>
module attributes {stable_mosaic.version = 11 : i64} {
  func.func @_lora_linear_kernel(%arg0: i32, %arg1: i32, %arg2: i32, %arg3: memref<16x128xf32, #tpu.memory_space<vmem>>, %arg4: memref<128x128xf32, #tpu.memory_space<vmem>>, %arg5: memref<1x128xf32, #tpu.memory_space<vmem>>, %arg6: memref<16x128xf32, #tpu.memory_space<vmem>>, %arg7: memref<128x128xf32, #tpu.memory_space<vmem>>, %arg8: memref<16x128xf32, #tpu.memory_space<vmem>>, %arg9: memref<16x128xf32, #tpu.memory_space<vmem>>) attributes {dimension_semantics = [#tpu.dimension_semantics<parallel>, #tpu.dimension_semantics<parallel>, #tpu.dimension_semantics<arbitrary>], iteration_bounds = array<i64: 1, 1, 1>, scalar_prefetch = 0 : i64, scratch_operands = 1 : i64, tpu.core_type = #tpu.core_type<tc>, window_params = [{transform_indices = @transform_0, window_bounds = array<i64: 16, 128>}, {transform_indices = @transform_1, window_bounds = array<i64: 128, 128>}, {transform_indices = @transform_2, window_bounds = array<i64: 1, 128>}, {transform_indices = @transform_3, window_bounds = array<i64: 16, 128>}, {transform_indices = @transform_4, window_bounds = array<i64: 128, 128>}, {transform_indices = @transform_5, window_bounds = array<i64: 16, 128>}]} {
    %c0_i32 = arith.constant 0 : i32
    %0 = arith.cmpi eq, %arg2, %c0_i32 : i32
    %1 = arith.extui %0 : i1 to i32
    %c0_i32_0 = arith.constant 0 : i32
    %2 = arith.cmpi ne, %1, %c0_i32_0 : i32
    scf.if %2 {
      %cst_10 = arith.constant 0.000000e+00 : f32
      %12 = vector.broadcast %cst_10 : f32 to vector<16x128xf32>
      %c0_11 = arith.constant 0 : index
      %c0_12 = arith.constant 0 : index
      %13 = vector.load %arg9[%c0_11, %c0_12] : memref<16x128xf32, #tpu.memory_space<vmem>>, vector<16x128xf32>
      tpu.vector_store %arg9[%c0_11, %c0_12], %12 {strides = array<i32>} : memref<16x128xf32, #tpu.memory_space<vmem>>, vector<16x128xf32>,
    } else {
    }
    %c0 = arith.constant 0 : index
    %c0_1 = arith.constant 0 : index
    %3 = vector.load %arg9[%c0, %c0_1] : memref<16x128xf32, #tpu.memory_space<vmem>>, vector<16x128xf32>
    %c0_2 = arith.constant 0 : index
    %c0_3 = arith.constant 0 : index
    %4 = vector.load %arg3[%c0_2, %c0_3] : memref<16x128xf32, #tpu.memory_space<vmem>>, vector<16x128xf32>
    %c0_4 = arith.constant 0 : index
    %c0_5 = arith.constant 0 : index
    %5 = vector.load %arg4[%c0_4, %c0_5] : memref<128x128xf32, #tpu.memory_space<vmem>>, vector<128x128xf32>
    %cst = arith.constant dense<0.000000e+00> : vector<16x128xf32>
    %6 = tpu.matmul %4, %5, %cst {dimension_numbers = #tpu.dot_dimension_numbers<[1], [0], [0], [1], [0, 0, 1, 1], [], []>} : vector<16x128xf32>, vector<128x128xf32>, vector<16x128xf32> -> vector<16x128xf32>
    %7 = arith.addf %3, %6 : vector<16x128xf32>
    %c0_6 = arith.constant 0 : index
    %c0_7 = arith.constant 0 : index
    %8 = vector.load %arg9[%c0_6, %c0_7] : memref<16x128xf32, #tpu.memory_space<vmem>>, vector<16x128xf32>
    tpu.vector_store %arg9[%c0_6, %c0_7], %7 {strides = array<i32>} : memref<16x128xf32, #tpu.memory_space<vmem>>, vector<16x128xf32>,
    %c0_i32_8 = arith.constant 0 : i32
    %9 = arith.cmpi eq, %arg2, %c0_i32_8 : i32
    %10 = arith.extui %9 : i1 to i32
    %c0_i32_9 = arith.constant 0 : i32
    %11 = arith.cmpi ne, %10, %c0_i32_9 : i32
    scf.if %11 {
      %c0_10 = arith.constant 0 : index
      %c0_11 = arith.constant 0 : index
      %12 = vector.load %arg6[%c0_10, %c0_11] : memref<16x128xf32, #tpu.memory_space<vmem>>, vector<16x128xf32>
      %c0_12 = arith.constant 0 : index
      %c0_13 = arith.constant 0 : index
      %13 = vector.load %arg7[%c0_12, %c0_13] : memref<128x128xf32, #tpu.memory_space<vmem>>, vector<128x128xf32>
      %cst_14 = arith.constant dense<0.000000e+00> : vector<16x128xf32>
      %14 = tpu.matmul %12, %13, %cst_14 {dimension_numbers = #tpu.dot_dimension_numbers<[1], [0], [0], [1], [0, 0, 1, 1], [], []>} : vector<16x128xf32>, vector<128x128xf32>, vector<16x128xf32> -> vector<16x128xf32>
      %c0_15 = arith.constant 0 : index
      %c0_16 = arith.constant 0 : index
      %15 = vector.load %arg9[%c0_15, %c0_16] : memref<16x128xf32, #tpu.memory_space<vmem>>, vector<16x128xf32>
      %c0_17 = arith.constant 0 : index
      %c0_18 = arith.constant 0 : index
      %16 = vector.load %arg5[%c0_17, %c0_18] : memref<1x128xf32, #tpu.memory_space<vmem>>, vector<1x128xf32>
      %17 = vector.broadcast %16 : vector<1x128xf32> to vector<16x128xf32>
      %18 = arith.addf %15, %17 : vector<16x128xf32>
      %19 = arith.addf %18, %14 : vector<16x128xf32>
      %c0_19 = arith.constant 0 : index
      %c0_20 = arith.constant 0 : index
      %20 = vector.load %arg8[%c0_19, %c0_20] : memref<16x128xf32, #tpu.memory_space<vmem>>, vector<16x128xf32>
      tpu.vector_store %arg8[%c0_19, %c0_20], %19 {strides = array<i32>} : memref<16x128xf32, #tpu.memory_space<vmem>>, vector<16x128xf32>,
    } else {
    }
    return
  }
  func.func @transform_0(%arg0: i32, %arg1: i32, %arg2: i32) -> (i32, i32) {
    %c0_i32 = arith.constant 0 : i32
    return %arg0, %arg2 : i32, i32
  }
  func.func @transform_1(%arg0: i32, %arg1: i32, %arg2: i32) -> (i32, i32) {
    %c0_i32 = arith.constant 0 : i32
    return %arg2, %arg1 : i32, i32
  }
  func.func @transform_2(%arg0: i32, %arg1: i32, %arg2: i32) -> (i32, i32) {
    %c0_i32 = arith.constant 0 : i32
    %c0_i32_0 = arith.constant 0 : i32
    return %c0_i32, %arg1 : i32, i32
  }
  func.func @transform_3(%arg0: i32, %arg1: i32, %arg2: i32) -> (i32, i32) {
    %c0_i32 = arith.constant 0 : i32
    %c0_i32_0 = arith.constant 0 : i32
    return %arg0, %c0_i32 : i32, i32
  }
  func.func @transform_4(%arg0: i32, %arg1: i32, %arg2: i32) -> (i32, i32) {
    %c0_i32 = arith.constant 0 : i32
    %c0_i32_0 = arith.constant 0 : i32
    return %c0_i32, %arg1 : i32, i32
  }
  func.func @transform_5(%arg0: i32, %arg1: i32, %arg2: i32) -> (i32, i32) {
    %c0_i32 = arith.constant 0 : i32
    return %arg0, %arg1 : i32, i32
  }
}

</mosaic_0001>

<bundles_post_ra>
// kernel: tpu_custom_call.1
= control target key start
LH: loop header
LB: loop body
LE: loop exit
PB: predicated region body
PF: predicated region fallthrough
CT: control target
= control target key end

     0   :  { %10 = vsyncpa [#allocation4], 0  ;;  %s603_s0 = inlined_call_operand.hbm [shape: f32[16,128], index: 0, kind: input, shape index: {}]   ;;  %s604_s1 = inlined_call_operand.hbm [shape: f32[128,128], index: 1, kind: input, shape index: {}]   ;;  %s605_s2 = inlined_call_operand.vmem [shape: f32[1,128], index: 2, kind: input, shape index: {}]   ;;  %s606_s3 = inlined_call_operand.hbm [shape: f32[16,128], index: 3, kind: input, shape index: {}]   ;;  %s607_s4 = inlined_call_operand.hbm [shape: f32[128,128], index: 4, kind: input, shape index: {}]   ;;  %s608_s5 = inlined_call_operand.hbm [shape: f32[16,128], index: 5, kind: output, shape index: {}]  }
   0x1   :  { %11 = vsyncpa [#allocation7], 0 }
   0x2   :  { %12 = vsyncpa [#allocation10], 0 }
   0x3   :  { %13 = vsyncpa [#allocation5], 0  ;;  %s533_s18 = smov [#allocation6]   ;;  %s534_s20 = smov [#allocation3]  }
   0x4   :  { %s31_s19 = sshll.u32 %s533_s18, 4  ;;  %s19_s21 = sshll.u32 %s534_s20, 4  ;;  %s32_s19 = int_to_ptr.vmem [resolvable:$true] %s31_s19  ;;  %s20_s21 = int_to_ptr.vmem [resolvable:$true] %s19_s21 }
   0x5   :  { %s433_s22 = scalar_lea.vmem %s32_s19, 2048  ;;  %p438_p1 = scmp.lt.s32.totalorder %s32_s19, %s32_s19 }
   0x6   :  { %p434_p0 = scmp.ne.s32.totalorder %s32_s19, %s433_s22  ;;  %p439_p2 = scmp.lt.s32.totalorder %s433_s22, %s433_s22 }
   0x8   :  { %p440_p3 = por %p439_p2, %p438_p1 }
   0xa   :  { %p441_p4 = pnand %p440_p3, %p434_p0 }
   0xc   :  { %444 = shalt.err (!%p441_p4)
}
   0xd   :  { %s535_s23 = smov 128   ;;  %s536_s24 = smov 8  }
   0xe   :  { %37 = dma.hbm_to_vmem [thread:$0]  %s604_s1, 2048, %s32_s19, [#allocation7], %s535_s23, %s535_s23, %s536_s24  }
   0xf   :  { %s453_s27 = scalar_lea.vmem %s20_s21, 256  ;;  %p458_p6 = scmp.lt.s32.totalorder %s20_s21, %s20_s21 }
  0x10   :  { %p454_p5 = scmp.ne.s32.totalorder %s20_s21, %s453_s27  ;;  %p459_p7 = scmp.lt.s32.totalorder %s453_s27, %s453_s27 }
  0x12   :  { %p460_p8 = por %p459_p7, %p458_p6 }
  0x14   :  { %p461_p9 = pnand %p460_p8, %p454_p5 }
  0x16   :  { %464 = shalt.err (!%p461_p9)
}
  0x17   :  { %25 = dma.hbm_to_vmem [thread:$0]  %s603_s0, 256, %s20_s21, [#allocation4], %s535_s23, %s535_s23, %s536_s24  }
  0x18   :  { %s537_s30 = smov [#allocation8]   ;;  %s538_s7 = smov [#allocation9]  }
  0x19   :  { %s45_s6 = sshll.u32 %s537_s30, 4  ;;  %s57_s8 = sshll.u32 %s538_s7, 4  ;;  %s46_s6 = int_to_ptr.vmem [resolvable:$true] %s45_s6  ;;  %s58_s8 = int_to_ptr.vmem [resolvable:$true] %s57_s8 }
  0x1a   :  { %s473_s1 = scalar_lea.vmem %s46_s6, 256  ;;  %p478_p11 = scmp.lt.s32.totalorder %s46_s6, %s46_s6 }
  0x1b   :  { %p474_p10 = scmp.ne.s32.totalorder %s46_s6, %s473_s1  ;;  %p479_p12 = scmp.lt.s32.totalorder %s473_s1, %s473_s1 }
  0x1d   :  { %p480_p13 = por %p479_p12, %p478_p11 }
  0x1f   :  { %p481_p0 = pnand %p480_p13, %p474_p10 }
  0x21   :  { %484 = shalt.err (!%p481_p0)
}
  0x22   :  { %51 = dma.hbm_to_vmem [thread:$0]  %s606_s3, 256, %s46_s6, [#allocation7], %s535_s23, %s535_s23, %s536_s24  }
  0x23   :  { %s493_s0 = scalar_lea.vmem %s58_s8, 2048  ;;  %p498_p2 = scmp.lt.s32.totalorder %s58_s8, %s58_s8 }
  0x24   :  { %p494_p1 = scmp.ne.s32.totalorder %s58_s8, %s493_s0  ;;  %p499_p3 = scmp.lt.s32.totalorder %s493_s0, %s493_s0 }
  0x26   :  { %p500_p4 = por %p499_p3, %p498_p2 }
  0x28   :  { %p501_p5 = pnand %p500_p4, %p494_p1 }
  0x2a   :  { %504 = shalt.err (!%p501_p5)
}
  0x2b   :  { %63 = dma.hbm_to_vmem [thread:$0]  %s607_s4, 2048, %s58_s8, [#allocation10], %s535_s23, %s535_s23, %s536_s24  }
  0x2c   :  { %525 = dma.done.wait [#allocation4], 256  }
  0x2d   :  { %526 = vsyncadd [#allocation4], 4294967040 }
  0x2e   :  { %527 = dma.done.wait [#allocation7], 2304  }
  0x2f   :  { %528 = vsyncadd [#allocation7], 4294964992 }
  0x30   :  { %529 = dma.done.wait [#allocation10], 2048  }
  0x31   :  { %530 = vsyncadd [#allocation10], 4294965248  ;;  %v101_v0 = vld [vmem:[#allocation6 + $0x78] sm:$0xff]  ;;  %v201_v1 = vld [vmem:[#allocation9 + $0x78] sm:$0xff]  ;;  %s539_s13 = smov [#allocation11]  }
  0x32   :  { %v100_v2 = vld [vmem:[#allocation6 + $0x70] sm:$0xff]  ;;  %348 = vmatprep.subr.mxu0 %v101_v0  ;;  %383 = vmatprep.subr.mxu1 %v201_v1  ;;  %v200_v3 = vld [vmem:[#allocation9 + $0x70] sm:$0xff]  ;;  %v99_v4 = vld [vmem:[#allocation6 + $0x68] sm:$0xff]  ;;  %s297_s14 = sshll.u32 %s539_s13, 4  ;;  %s298_s14 = int_to_ptr.vmem [resolvable:$true] %s297_s14 }
  0x33   :  { %349 = vmatpush3.msra.mxu0 %v101_v0  ;;  %384 = vmatpush3.msra.mxu1 %v201_v1  ;;  %v199_v5 = vld [vmem:[#allocation9 + $0x68] sm:$0xff]  ;;  %v98_v6 = vld [vmem:[#allocation6 + $0x60] sm:$0xff]  ;;  %v198_v7 = vld [vmem:[#allocation9 + $0x60] sm:$0xff]  ;;  %s505_s15 = scalar_lea.vmem %s298_s14, 256  ;;  %p510_p7 = scmp.lt.s32.totalorder %s298_s14, %s298_s14 }
  0x34   :  { %350 = vmatprep.subr.mxu0 %v100_v2  ;;  %385 = vmatprep.subr.mxu1 %v200_v3  ;;  %v97_v8 = vld [vmem:[#allocation6 + $0x58] sm:$0xff]  ;;  %v197_v9 = vld [vmem:[#allocation9 + $0x58] sm:$0xff]  ;;  %v96_v10 = vld [vmem:[#allocation6 + $0x50] sm:$0xff]  ;;  %p506_p6 = scmp.ne.s32.totalorder %s298_s14, %s505_s15  ;;  %p511_p8 = scmp.lt.s32.totalorder %s505_s15, %s505_s15 }
  0x35   :  { %351 = vmatpush3.msra.mxu0 %v100_v2  ;;  %386 = vmatpush3.msra.mxu1 %v200_v3  ;;  %v196_v11 = vld [vmem:[#allocation9 + $0x50] sm:$0xff]  ;;  %v95_v12 = vld [vmem:[#allocation6 + $0x48] sm:$0xff]  ;;  %v195_v13 = vld [vmem:[#allocation9 + $0x48] sm:$0xff] }
  0x36   :  { %352 = vmatprep.subr.mxu0 %v99_v4  ;;  %387 = vmatprep.subr.mxu1 %v199_v5  ;;  %v94_v14 = vld [vmem:[#allocation6 + $0x40] sm:$0xff]  ;;  %v194_v15 = vld [vmem:[#allocation9 + $0x40] sm:$0xff]  ;;  %v93_v16 = vld [vmem:[#allocation6 + $0x38] sm:$0xff]  ;;  %p512_p9 = por %p511_p8, %p510_p7 }
  0x37   :  { %353 = vmatpush3.msra.mxu0 %v99_v4  ;;  %388 = vmatpush3.msra.mxu1 %v199_v5  ;;  %v193_v17 = vld [vmem:[#allocation9 + $0x38] sm:$0xff]  ;;  %v92_v18 = vld [vmem:[#allocation6 + $0x30] sm:$0xff]  ;;  %v192_v19 = vld [vmem:[#allocation9 + $0x30] sm:$0xff] }
  0x38   :  { %354 = vmatprep.subr.mxu0 %v98_v6  ;;  %389 = vmatprep.subr.mxu1 %v198_v7  ;;  %v91_v20 = vld [vmem:[#allocation6 + $0x28] sm:$0xff]  ;;  %v191_v21 = vld [vmem:[#allocation9 + $0x28] sm:$0xff]  ;;  %v90_v22 = vld [vmem:[#allocation6 + $0x20] sm:$0xff]  ;;  %p513_p10 = pnand %p512_p9, %p506_p6 }
  0x39   :  { %355 = vmatpush3.msra.mxu0 %v98_v6  ;;  %390 = vmatpush3.msra.mxu1 %v198_v7  ;;  %v190_v23 = vld [vmem:[#allocation9 + $0x20] sm:$0xff]  ;;  %v89_v24 = vld [vmem:[#allocation6 + $0x18] sm:$0xff]  ;;  %v189_v25 = vld [vmem:[#allocation9 + $0x18] sm:$0xff] }
  0x3a   :  { %356 = vmatprep.subr.mxu0 %v97_v8  ;;  %391 = vmatprep.subr.mxu1 %v197_v9  ;;  %v88_v26 = vld [vmem:[#allocation6 + $0x10] sm:$0xff]  ;;  %v188_v27 = vld [vmem:[#allocation9 + $0x10] sm:$0xff]  ;;  %v87_v28 = vld [vmem:[#allocation6 + $0x8] sm:$0xff] }
  0x3b   :  { %357 = vmatpush3.msra.mxu0 %v97_v8  ;;  %392 = vmatpush3.msra.mxu1 %v197_v9  ;;  %v187_v29 = vld [vmem:[#allocation9 + $0x8] sm:$0xff]  ;;  %v86_v30 = vld [vmem:[#allocation6] sm:$0xff]  ;;  %v186_v31 = vld [vmem:[#allocation9] sm:$0xff] }
  0x3c   :  { %358 = vmatprep.subr.mxu0 %v96_v10  ;;  %393 = vmatprep.subr.mxu1 %v196_v11  ;;  %v84_v32 = vld [vmem:[#allocation3] sm:$0xff]  ;;  %v184_v33 = vld [vmem:[#allocation8] sm:$0xff]  ;;  %v85_v34 = vld [vmem:[#allocation3 + $0x8] sm:$0xff] }
  0x3d   :  { %359 = vmatpush3.msra.mxu0 %v96_v10  ;;  %394 = vmatpush3.msra.mxu1 %v196_v11  ;;  %v185_v35 = vld [vmem:[#allocation8 + $0x8] sm:$0xff]  ;;  %v311_v36 = vld [vmem:[%s605_s2] ss:$0 sm:$0xff] }
  0x3e   :  { %360 = vmatprep.subr.mxu0 %v95_v12  ;;  %395 = vmatprep.subr.mxu1 %v195_v13 }
  0x3f   :  { %361 = vmatpush3.msra.mxu0 %v95_v12  ;;  %396 = vmatpush3.msra.mxu1 %v195_v13 }
  0x40   :  { %362 = vmatprep.subr.mxu0 %v94_v14  ;;  %397 = vmatprep.subr.mxu1 %v194_v15 }
  0x41   :  { %363 = vmatpush3.msra.mxu0 %v94_v14  ;;  %398 = vmatpush3.msra.mxu1 %v194_v15 }
  0x42   :  { %364 = vmatprep.subr.mxu0 %v93_v16  ;;  %399 = vmatprep.subr.mxu1 %v193_v17 }
  0x43   :  { %365 = vmatpush3.msra.mxu0 %v93_v16  ;;  %400 = vmatpush3.msra.mxu1 %v193_v17 }
  0x44   :  { %366 = vmatprep.subr.mxu0 %v92_v18  ;;  %401 = vmatprep.subr.mxu1 %v192_v19 }
  0x45   :  { %367 = vmatpush3.msra.mxu0 %v92_v18  ;;  %402 = vmatpush3.msra.mxu1 %v192_v19 }
  0x46   :  { %368 = vmatprep.subr.mxu0 %v91_v20  ;;  %403 = vmatprep.subr.mxu1 %v191_v21 }
  0x47   :  { %369 = vmatpush3.msra.mxu0 %v91_v20  ;;  %404 = vmatpush3.msra.mxu1 %v191_v21 }
  0x48   :  { %370 = vmatprep.subr.mxu0 %v90_v22  ;;  %405 = vmatprep.subr.mxu1 %v190_v23 }
  0x49   :  { %371 = vmatpush3.msra.mxu0 %v90_v22  ;;  %406 = vmatpush3.msra.mxu1 %v190_v23 }
  0x4a   :  { %372 = vmatprep.subr.mxu0 %v89_v24  ;;  %407 = vmatprep.subr.mxu1 %v189_v25 }
  0x4b   :  { %373 = vmatpush3.msra.mxu0 %v89_v24  ;;  %408 = vmatpush3.msra.mxu1 %v189_v25 }
  0x4c   :  { %374 = vmatprep.subr.mxu0 %v88_v26  ;;  %409 = vmatprep.subr.mxu1 %v188_v27 }
  0x4d   :  { %375 = vmatpush3.msra.mxu0 %v88_v26  ;;  %410 = vmatpush3.msra.mxu1 %v188_v27 }
  0x4e   :  { %376 = vmatprep.subr.mxu0 %v87_v28  ;;  %411 = vmatprep.subr.mxu1 %v187_v29 }
  0x4f   :  { %377 = vmatpush3.msra.mxu0 %v87_v28  ;;  %412 = vmatpush3.msra.mxu1 %v187_v29 }
  0x50   :  { %378 = vmatprep.subr.mxu0 %v86_v30  ;;  %413 = vmatprep.subr.mxu1 %v186_v31 }
  0x51   :  { %379 = vmatpush3.msra.mxu0 %v86_v30  ;;  %380 = vmatprep.mubr.f32.mxu0 %v84_v32 }
  0x52   :  { %414 = vmatpush3.msra.mxu1 %v186_v31  ;;  %415 = vmatprep.mubr.f32.mxu1 %v184_v33 }
  0x53   :  { %381 = vmatmul.mubr.f32.vlgmr.msra.gmra.mxu0 %v85_v34  ;;  %416 = vmatmul.mubr.f32.vlgmr.msra.gmra.mxu1 %v185_v35 }
 0x113   :  { %v382_v37 = vpop.f32.mrf.mxu0  ;;  %v417_v38 = vpop.f32.mrf.mxu1 }
 0x114   :  { %v287_v39 = vadd.f32 %v382_v37, %v311_v36 }
 0x115   :  { %v168_v40 = vpop.f32.mrf.mxu0  ;;  %v268_v43 = vpop.f32.mrf.mxu1 }
 0x116   :  { %v289_v41 = vadd.f32 %v417_v38, %v287_v39  ;;  %v286_v42 = vadd.f32 %v311_v36, %v168_v40 }
 0x118   :  { %291 = vst [vmem:[#allocation11 + $0x8] sm:$0xff] %v289_v41  ;;  %v288_v44 = vadd.f32 %v286_v42, %v268_v43 }
 0x11a   :  { %290 = vst [vmem:[#allocation11] sm:$0xff] %v288_v44 }
 0x11b   :  { %516 = shalt.err (!%p513_p10)
}
 0x11c   :  { %303 = dma.vmem_to_hbm [thread:$0]  %s298_s14, 256, %s608_s5, [#allocation5], %s535_s23, %s535_s23, %s536_s24  }
 0x11d   :  { %531 = dma.done.wait [#allocation5], 256  }
 0x11e   :  { %532 = vsyncadd [#allocation5], 4294967040 }
 0x11f   :  { %307 = vsyncpa [#allocation4], 1 }
 0x120   :  { %308 = vsyncpa [#allocation7], 1 }
 0x121   :  { %309 = vsyncpa [#allocation10], 1 }
 0x122   :  { %310 = vsyncpa [#allocation5], 1 }

</bundles_post_ra>
